<compile_context>
chip_gen: v5e
topology: v5e:2x2
jax: 0.10.0
libtpu: 0.0.40
codegen_flags: <defaults>
</compile_context>

<pallas_src>
import math

import jax
import jax.numpy as jnp
from jax.experimental import pallas as pl
from jax.experimental.pallas import tpu as pltpu

IN_F = 28 * 28   # 784
H = 128
OUT_F = 10
OUT_PAD = 128    # lane-dense padded output width
COMPUTE_DTYPE = jnp.bfloat16


def mlp_kernel(x_ref, w1_ref, b1_ref, w2_ref, b2_ref, w3_ref, b3_ref, o_ref):
    # In-kernel f32 -> bf16 cast of the streamed activation tile (the f32 input
    # is read from HBM exactly once; no separate convert pass).
    x = x_ref[...].astype(w1_ref.dtype)
    # Layer 1: (TB,784)bf16 @ (784,128)bf16 -> f32 accumulate; bias+ReLU in f32.
    h1 = jnp.dot(x, w1_ref[...], preferred_element_type=jnp.float32)
    h1 = jnp.maximum(h1 + b1_ref[...], 0.0)
    # Layer 2: (TB,128) @ (128,128)
    h2 = jnp.dot(h1.astype(w2_ref.dtype), w2_ref[...],
                 preferred_element_type=jnp.float32)
    h2 = jnp.maximum(h2 + b2_ref[...], 0.0)
    # Layer 3: (TB,128) @ (128,128)  (columns 10..127 of w3/b3 are zero padding
    # so the output store is lane-dense / unmasked).
    h3 = jnp.dot(h2.astype(w3_ref.dtype), w3_ref[...],
                 preferred_element_type=jnp.float32)
    o_ref[...] = (h3 + b3_ref[...]).astype(o_ref.dtype)


def _round_up(x, m):
    return (x + m - 1) // m * m


def _choose_tb(B):
    """Batch-tile rows per grid step."""
    if B <= 256:
        # Single tile covering the whole (small) batch, 8-row sublane multiple.
        return _round_up(B, 8)
    # Larger batches: split into at least two grid steps so the "parallel"
    # batch axis can be sharded across v7x's two TensorCores, capped at 2048
    # rows/tile. Double-buffered (2048,784) f32 input + (2048,128) bf16 output
    # + resident weights is ~13 MiB -> fits every generation's scoped VMEM.
    half = _round_up((B + 1) // 2, 256)
    return min(2048, half)


def prepare_params(params, compute_dtype=COMPUTE_DTYPE):
    """One-time parameter preparation (hoisted out of the per-call forward).

    bf16 weight casts, f32 biases, and lane-padding of the final layer from
    10 -> 128 output columns (zero weight/bias columns).
    """
    w1, b1, w2, b2, w3, b3 = params
    w1c = w1.astype(compute_dtype)
    w2c = w2.astype(compute_dtype)
    w3c = jnp.pad(w3, ((0, 0), (0, OUT_PAD - OUT_F))).astype(compute_dtype)
    b1c = b1.astype(jnp.float32)
    b2c = b2.astype(jnp.float32)
    b3c = jnp.pad(b3, ((0, 0), (0, OUT_PAD - OUT_F))).astype(jnp.float32)
    return (w1c, b1c, w2c, b2c, w3c, b3c)


def neural_network_forward(x, prepared_params):
    """x: (B, 28, 28) float32. Returns logits (B, 10) float32."""
    w1c, b1c, w2c, b2c, w3c, b3c = prepared_params
    B = x.shape[0]
    x_flat = x.reshape(B, IN_F)          # nn.Flatten (free view; stays f32)

    TB = _choose_tb(B)
    n_steps = -(-B // TB)                # cdiv: no batch-padding HBM pass; the
    grid = (n_steps,)                    # partial last block is masked by Pallas

    # Weights/biases stay resident in VMEM across all grid steps.
    resident = lambda shape: pl.BlockSpec(shape, lambda i: (0, 0))

    rows = n_steps * TB
    wbytes = (IN_F * H + H * H + H * OUT_PAD) * 2 + (H + H + OUT_PAD) * 4
    flops = 2 * rows * (IN_F * H + H * H + H * OUT_PAD)
    bytes_accessed = (
        rows * IN_F * 4        # streamed f32 input
        + rows * OUT_PAD * 2   # streamed bf16 output
        + wbytes               # resident weights + biases
    )

    out = pl.pallas_call(
        mlp_kernel,
        out_shape=jax.ShapeDtypeStruct((B, OUT_PAD), jnp.bfloat16),
        grid_spec=pltpu.PrefetchScalarGridSpec(
            num_scalar_prefetch=0,
            grid=grid,
            in_specs=[
                pl.BlockSpec((TB, IN_F), lambda i: (i, 0)),  # streamed batch tile (f32)
                resident((IN_F, H)),
                resident((1, H)),
                resident((H, H)),
                resident((1, H)),
                resident((H, OUT_PAD)),
                resident((1, OUT_PAD)),
            ],
            out_specs=pl.BlockSpec((TB, OUT_PAD), lambda i: (i, 0)),
        ),
        compiler_params=pltpu.CompilerParams(
            dimension_semantics=("parallel",),  # megacore sharding on v7x
        ),
        cost_estimate=pl.CostEstimate(
            flops=flops, transcendentals=0, bytes_accessed=bytes_accessed),
    )(x_flat, w1c, b1c, w2c, b2c, w3c, b3c)

    # Drop the 118 zero output lanes; return f32 logits to the caller.
    return out[:, :OUT_F].astype(jnp.float32)


def init_params(key):
    """Deterministic init matching torch.nn.Linear default (uniform +/- 1/sqrt(fan_in)).

    Weights stored transposed relative to torch: (in_features, out_features).
    Biases stored as (1, out_features) for TPU-friendly 2D layout.
    """
    dims = [(IN_F, H), (H, H), (H, OUT_F)]
    params = []
    for (fan_in, fan_out) in dims:
        key, kw, kb = jax.random.split(key, 3)
        bound = 1.0 / math.sqrt(fan_in)
        w = jax.random.uniform(kw, (fan_in, fan_out), jnp.float32, -bound, bound)
        b = jax.random.uniform(kb, (1, fan_out), jnp.float32, -bound, bound)
        params += [w, b]
    return tuple(params)


def reference_forward(x, params, compute_dtype=jnp.float32):
    """Plain-JAX reference (same math; optional low-precision weight/act cast)."""
    w1, b1, w2, b2, w3, b3 = params
    xf = x.reshape(x.shape[0], -1).astype(compute_dtype)
    h = jnp.dot(xf, w1.astype(compute_dtype),
                preferred_element_type=jnp.float32) + b1
    h = jnp.maximum(h, 0.0)
    h = jnp.dot(h.astype(compute_dtype), w2.astype(compute_dtype),
                preferred_element_type=jnp.float32) + b2
    h = jnp.maximum(h, 0.0)
    return jnp.dot(h.astype(compute_dtype), w3.astype(compute_dtype),
                   preferred_element_type=jnp.float32) + b3


if __name__ == "__main__":
    key = jax.random.PRNGKey(0)
    key, kx = jax.random.split(key)

    B = 16  # small demo batch
    x = jax.random.normal(kx, (B, 28, 28), dtype=jnp.float32)
    params = init_params(key)

    prepared = prepare_params(params)          # one-time weight prep
    forward = jax.jit(neural_network_forward)  # fuses final slice/cast

    logits = forward(x, prepared)
    logits = jax.block_until_ready(logits)
    assert logits.shape == (B, OUT_F)
    assert logits.dtype == jnp.float32

    # Check against a bf16-cast reference (same precision path as the kernel;
    # kernel additionally rounds the final logits to bf16).
    ref_bf16 = reference_forward(x, params, compute_dtype=jnp.bfloat16)
    assert jnp.allclose(logits, ref_bf16, atol=1e-2, rtol=1e-2)

    # Sanity-check against the full-f32 reference with a loose tolerance.
    ref_f32 = reference_forward(x, params, compute_dtype=jnp.float32)
    assert jnp.allclose(logits, ref_f32, atol=5e-2, rtol=5e-2)

    print("KERNEL_OK")
</pallas_src>

<mosaic_0001>
module attributes {stable_mosaic.version = 11 : i64} {
  func.func @mlp_kernel(%arg0: i32, %arg1: memref<16x784xf32, #tpu.memory_space<vmem>>, %arg2: memref<784x128xbf16, #tpu.memory_space<vmem>>, %arg3: memref<1x128xf32, #tpu.memory_space<vmem>>, %arg4: memref<128x128xbf16, #tpu.memory_space<vmem>>, %arg5: memref<1x128xf32, #tpu.memory_space<vmem>>, %arg6: memref<128x128xbf16, #tpu.memory_space<vmem>>, %arg7: memref<1x128xf32, #tpu.memory_space<vmem>>, %arg8: memref<16x128xbf16, #tpu.memory_space<vmem>>) attributes {dimension_semantics = [#tpu.dimension_semantics<parallel>], iteration_bounds = array<i64: 1>, scalar_prefetch = 0 : i64, scratch_operands = 0 : i64, tpu.core_type = #tpu.core_type<tc>, window_params = [{transform_indices = @transform_0, window_bounds = array<i64: 16, 784>}, {pipeline_mode = #tpu.pipeline_mode<synchronous>, transform_indices = @transform_1, window_bounds = array<i64: 784, 128>}, {pipeline_mode = #tpu.pipeline_mode<synchronous>, transform_indices = @transform_2, window_bounds = array<i64: 1, 128>}, {pipeline_mode = #tpu.pipeline_mode<synchronous>, transform_indices = @transform_3, window_bounds = array<i64: 128, 128>}, {pipeline_mode = #tpu.pipeline_mode<synchronous>, transform_indices = @transform_4, window_bounds = array<i64: 1, 128>}, {pipeline_mode = #tpu.pipeline_mode<synchronous>, transform_indices = @transform_5, window_bounds = array<i64: 128, 128>}, {pipeline_mode = #tpu.pipeline_mode<synchronous>, transform_indices = @transform_6, window_bounds = array<i64: 1, 128>}, {transform_indices = @transform_7, window_bounds = array<i64: 16, 128>}]} {
    %c0 = arith.constant 0 : index
    %c0_0 = arith.constant 0 : index
    %0 = vector.load %arg1[%c0, %c0_0] : memref<16x784xf32, #tpu.memory_space<vmem>>, vector<16x784xf32>
    %1 = arith.truncf %0 : vector<16x784xf32> to vector<16x784xbf16>
    %c0_1 = arith.constant 0 : index
    %c0_2 = arith.constant 0 : index
    %2 = vector.load %arg2[%c0_1, %c0_2] : memref<784x128xbf16, #tpu.memory_space<vmem>>, vector<784x128xbf16>
    %cst = arith.constant dense<0.000000e+00> : vector<16x128xf32>
    %3 = tpu.matmul %1, %2, %cst {dimension_numbers = #tpu.dot_dimension_numbers<[1], [0], [0], [1], [0, 0, 1, 1], [], []>} : vector<16x784xbf16>, vector<784x128xbf16>, vector<16x128xf32> -> vector<16x128xf32>
    %c0_3 = arith.constant 0 : index
    %c0_4 = arith.constant 0 : index
    %4 = vector.load %arg3[%c0_3, %c0_4] : memref<1x128xf32, #tpu.memory_space<vmem>>, vector<1x128xf32>
    %5 = vector.broadcast %4 : vector<1x128xf32> to vector<16x128xf32>
    %6 = arith.addf %3, %5 : vector<16x128xf32>
    %cst_5 = arith.constant 0.000000e+00 : f32
    %7 = vector.broadcast %cst_5 : f32 to vector<16x128xf32>
    %8 = arith.maximumf %6, %7 : vector<16x128xf32>
    %9 = arith.truncf %8 : vector<16x128xf32> to vector<16x128xbf16>
    %c0_6 = arith.constant 0 : index
    %c0_7 = arith.constant 0 : index
    %10 = vector.load %arg4[%c0_6, %c0_7] : memref<128x128xbf16, #tpu.memory_space<vmem>>, vector<128x128xbf16>
    %cst_8 = arith.constant dense<0.000000e+00> : vector<16x128xf32>
    %11 = tpu.matmul %9, %10, %cst_8 {dimension_numbers = #tpu.dot_dimension_numbers<[1], [0], [0], [1], [0, 0, 1, 1], [], []>} : vector<16x128xbf16>, vector<128x128xbf16>, vector<16x128xf32> -> vector<16x128xf32>
    %c0_9 = arith.constant 0 : index
    %c0_10 = arith.constant 0 : index
    %12 = vector.load %arg5[%c0_9, %c0_10] : memref<1x128xf32, #tpu.memory_space<vmem>>, vector<1x128xf32>
    %13 = vector.broadcast %12 : vector<1x128xf32> to vector<16x128xf32>
    %14 = arith.addf %11, %13 : vector<16x128xf32>
    %cst_11 = arith.constant 0.000000e+00 : f32
    %15 = vector.broadcast %cst_11 : f32 to vector<16x128xf32>
    %16 = arith.maximumf %14, %15 : vector<16x128xf32>
    %17 = arith.truncf %16 : vector<16x128xf32> to vector<16x128xbf16>
    %c0_12 = arith.constant 0 : index
    %c0_13 = arith.constant 0 : index
    %18 = vector.load %arg6[%c0_12, %c0_13] : memref<128x128xbf16, #tpu.memory_space<vmem>>, vector<128x128xbf16>
    %cst_14 = arith.constant dense<0.000000e+00> : vector<16x128xf32>
    %19 = tpu.matmul %17, %18, %cst_14 {dimension_numbers = #tpu.dot_dimension_numbers<[1], [0], [0], [1], [0, 0, 1, 1], [], []>} : vector<16x128xbf16>, vector<128x128xbf16>, vector<16x128xf32> -> vector<16x128xf32>
    %c0_15 = arith.constant 0 : index
    %c0_16 = arith.constant 0 : index
    %20 = vector.load %arg7[%c0_15, %c0_16] : memref<1x128xf32, #tpu.memory_space<vmem>>, vector<1x128xf32>
    %21 = vector.broadcast %20 : vector<1x128xf32> to vector<16x128xf32>
    %22 = arith.addf %19, %21 : vector<16x128xf32>
    %23 = arith.truncf %22 : vector<16x128xf32> to vector<16x128xbf16>
    %c0_17 = arith.constant 0 : index
    %c0_18 = arith.constant 0 : index
    %24 = vector.load %arg8[%c0_17, %c0_18] : memref<16x128xbf16, #tpu.memory_space<vmem>>, vector<16x128xbf16>
    tpu.vector_store %arg8[%c0_17, %c0_18], %23 {strides = array<i32>} : memref<16x128xbf16, #tpu.memory_space<vmem>>, vector<16x128xbf16>,
    return
  }
  func.func @transform_0(%arg0: i32) -> (i32, i32) {
    %c0_i32 = arith.constant 0 : i32
    %c0_i32_0 = arith.constant 0 : i32
    return %arg0, %c0_i32 : i32, i32
  }
  func.func @transform_1(%arg0: i32) -> (i32, i32) {
    %c0_i32 = arith.constant 0 : i32
    %c0_i32_0 = arith.constant 0 : i32
    %c0_i32_1 = arith.constant 0 : i32
    return %c0_i32, %c0_i32_0 : i32, i32
  }
  func.func @transform_2(%arg0: i32) -> (i32, i32) {
    %c0_i32 = arith.constant 0 : i32
    %c0_i32_0 = arith.constant 0 : i32
    %c0_i32_1 = arith.constant 0 : i32
    return %c0_i32, %c0_i32_0 : i32, i32
  }
  func.func @transform_3(%arg0: i32) -> (i32, i32) {
    %c0_i32 = arith.constant 0 : i32
    %c0_i32_0 = arith.constant 0 : i32
    %c0_i32_1 = arith.constant 0 : i32
    return %c0_i32, %c0_i32_0 : i32, i32
  }
  func.func @transform_4(%arg0: i32) -> (i32, i32) {
    %c0_i32 = arith.constant 0 : i32
    %c0_i32_0 = arith.constant 0 : i32
    %c0_i32_1 = arith.constant 0 : i32
    return %c0_i32, %c0_i32_0 : i32, i32
  }
  func.func @transform_5(%arg0: i32) -> (i32, i32) {
    %c0_i32 = arith.constant 0 : i32
    %c0_i32_0 = arith.constant 0 : i32
    %c0_i32_1 = arith.constant 0 : i32
    return %c0_i32, %c0_i32_0 : i32, i32
  }
  func.func @transform_6(%arg0: i32) -> (i32, i32) {
    %c0_i32 = arith.constant 0 : i32
    %c0_i32_0 = arith.constant 0 : i32
    %c0_i32_1 = arith.constant 0 : i32
    return %c0_i32, %c0_i32_0 : i32, i32
  }
  func.func @transform_7(%arg0: i32) -> (i32, i32) {
    %c0_i32 = arith.constant 0 : i32
    %c0_i32_0 = arith.constant 0 : i32
    return %arg0, %c0_i32 : i32, i32
  }
}

</mosaic_0001>

<bundles_post_ra>
// kernel: neural_network_forward.1
= control target key start
LH: loop header
LB: loop body
LE: loop exit
PB: predicated region body
PF: predicated region fallthrough
CT: control target
= control target key end

     0   :  { %vm444_vm0 = vcmask 130048   ;;  %s1347_s1 = inlined_call_operand.vmem [shape: bf16[784,128], index: 1, kind: input, shape index: {}]   ;;  %s1348_s2 = inlined_call_operand.vmem [shape: f32[1,128], index: 2, kind: input, shape index: {}]   ;;  %s1349_s0 = inlined_call_operand.vmem [shape: f32[16,784], index: 0, kind: input, shape index: {}]   ;;  %s1350_s4 = inlined_call_operand.vmem [shape: f32[1,128], index: 4, kind: input, shape index: {}]   ;;  %s1351_s3 = inlined_call_operand.vmem [shape: bf16[128,128], index: 3, kind: input, shape index: {}]   ;;  %s1352_s5 = inlined_call_operand.vmem [shape: bf16[128,128], index: 5, kind: input, shape index: {}]   ;;  %s1353_s6 = inlined_call_operand.vmem [shape: f32[1,128], index: 6, kind: input, shape index: {}]   ;;  %s1354_s7 = inlined_call_operand.vmem [shape: bf16[16,128], index: 7, kind: output, shape index: {}]  }
   0x1   :  { %v992_v0 = vld [vmem:[%s1347_s1 + $0x38] sm:$0xff]  ;;  %v991_v4 = vld [vmem:[%s1347_s1 + $0x30] sm:$0xff]  ;;  %v990_v8 = vld [vmem:[%s1347_s1 + $0x28] sm:$0xff] }
   0x2   :  { %v1000_v1 = vld [vmem:[%s1347_s1 + $0x78] sm:$0xff]  ;;  %448 = vmatpush.bf16.msra.mxu0 %v992_v0  ;;  %v999_v5 = vld [vmem:[%s1347_s1 + $0x70] sm:$0xff]  ;;  %v998_v9 = vld [vmem:[%s1347_s1 + $0x68] sm:$0xff] }
   0x3   :  { %v1008_v2 = vld [vmem:[%s1347_s1 + $0xb8] sm:$0xff]  ;;  %462 = vmatpush.bf16.msra.mxu1 %v1000_v1  ;;  %v1007_v6 = vld [vmem:[%s1347_s1 + $0xb0] sm:$0xff]  ;;  %v1006_v10 = vld [vmem:[%s1347_s1 + $0xa8] sm:$0xff] }
   0x4   :  { %v1016_v3 = vld [vmem:[%s1347_s1 + $0xf8] sm:$0xff]  ;;  %476 = vmatpush.bf16.msra.mxu2 %v1008_v2  ;;  %v1015_v7 = vld [vmem:[%s1347_s1 + $0xf0] sm:$0xff]  ;;  %v1014_v11 = vld [vmem:[%s1347_s1 + $0xe8] sm:$0xff] }
   0x5   :  { %490 = vmatpush.bf16.msra.mxu3 %v1016_v3  ;;  %v989_v12 = vld [vmem:[%s1347_s1 + $0x20] sm:$0xff]  ;;  %v988_v16 = vld [vmem:[%s1347_s1 + $0x18] sm:$0xff]  ;;  %v987_v20 = vld [vmem:[%s1347_s1 + $0x10] sm:$0xff] }
   0x6   :  { %449 = vmatpush.bf16.msra.mxu0 %v991_v4  ;;  %v997_v13 = vld [vmem:[%s1347_s1 + $0x60] sm:$0xff]  ;;  %v996_v17 = vld [vmem:[%s1347_s1 + $0x58] sm:$0xff]  ;;  %v995_v21 = vld [vmem:[%s1347_s1 + $0x50] sm:$0xff] }
   0x7   :  { %463 = vmatpush.bf16.msra.mxu1 %v999_v5  ;;  %v1005_v14 = vld [vmem:[%s1347_s1 + $0xa0] sm:$0xff]  ;;  %v1004_v18 = vld [vmem:[%s1347_s1 + $0x98] sm:$0xff]  ;;  %v1003_v22 = vld [vmem:[%s1347_s1 + $0x90] sm:$0xff] }
   0x8   :  { %477 = vmatpush.bf16.msra.mxu2 %v1007_v6  ;;  %v1013_v15 = vld [vmem:[%s1347_s1 + $0xe0] sm:$0xff]  ;;  %v1012_v19 = vld [vmem:[%s1347_s1 + $0xd8] sm:$0xff]  ;;  %v1011_v23 = vld [vmem:[%s1347_s1 + $0xd0] sm:$0xff] }
   0x9   :  { %491 = vmatpush.bf16.msra.mxu3 %v1015_v7  ;;  %v986_v24 = vld [vmem:[%s1347_s1 + $0x8] sm:$0xff]  ;;  %v985_v28 = vld [vmem:[%s1347_s1] sm:$0xff]  ;;  %v34_v31 = vld [vmem:[%s1349_s0 + $0x38] sm:$0xff] }
   0xa   :  { %450 = vmatpush.bf16.msra.mxu0 %v990_v8  ;;  %v994_v25 = vld [vmem:[%s1347_s1 + $0x48] sm:$0xff]  ;;  %v993_v29 = vld [vmem:[%s1347_s1 + $0x40] sm:$0xff]  ;;  %v1024_v34 = vld [vmem:[%s1347_s1 + $0x138] sm:$0xff] }
   0xb   :  { %464 = vmatpush.bf16.msra.mxu1 %v998_v9  ;;  %v1002_v26 = vld [vmem:[%s1347_s1 + $0x88] sm:$0xff]  ;;  %v27_v30 = vld [vmem:[%s1349_s0] sm:$0xff]  ;;  %v1032_v35 = vld [vmem:[%s1347_s1 + $0x178] sm:$0xff] }
   0xc   :  { %478 = vmatpush.bf16.msra.mxu2 %v1006_v10  ;;  %v1010_v27 = vld [vmem:[%s1347_s1 + $0xc8] sm:$0xff]  ;;  %v35_v33 = vld [vmem:[%s1349_s0 + $0x40] sm:$0xff]  ;;  %v29_v38 = vld [vmem:[%s1349_s0 + $0x10] sm:$0xff]  ;;  %v41_v40 = vpack.c.bf16 %v34_v31, %v27_v30 }
   0xd   :  { %492 = vmatpush.bf16.msra.mxu3 %v1014_v11  ;;  %v28_v32 = vld [vmem:[%s1349_s0 + $0x8] sm:$0xff]  ;;  %v1001_v36 = vld [vmem:[%s1347_s1 + $0x80] sm:$0xff]  ;;  %v30_v41 = vld [vmem:[%s1349_s0 + $0x18] sm:$0xff] }
   0xe   :  { %451 = vmatpush.bf16.msra.mxu0 %v989_v12  ;;  %v1009_v37 = vld [vmem:[%s1347_s1 + $0xc0] sm:$0xff]  ;;  %v36_v39 = vld [vmem:[%s1349_s0 + $0x48] sm:$0xff]  ;;  %v37_v42 = vld [vmem:[%s1349_s0 + $0x50] sm:$0xff]  ;;  %v42_v43 = vpack.c.bf16 %v35_v33, %v28_v32 }
   0xf   :  { %465 = vmatpush.bf16.msra.mxu1 %v997_v13  ;;  %v1033_v44 = vld [vmem:[%s1347_s1 + $0x180] sm:$0xff]  ;;  %v1023_v45 = vld [vmem:[%s1347_s1 + $0x130] sm:$0xff]  ;;  %v43_v47 = vpack.c.bf16 %v36_v39, %v29_v38  ;;  %v44_v48 = vpack.c.bf16 %v37_v42, %v30_v41  ;;  %v1022_v49 = vld [vmem:[%s1347_s1 + $0x128] sm:$0xff] }
  0x10   :  { %479 = vmatpush.bf16.msra.mxu2 %v1005_v14  ;;  %v1031_v46 = vld [vmem:[%s1347_s1 + $0x170] sm:$0xff]  ;;  %v1030_v50 = vld [vmem:[%s1347_s1 + $0x168] sm:$0xff]  ;;  %v1021_v51 = vld [vmem:[%s1347_s1 + $0x120] sm:$0xff] }
  0x11   :  { %493 = vmatpush.bf16.msra.mxu3 %v1013_v15  ;;  %v1029_v52 = vld [vmem:[%s1347_s1 + $0x160] sm:$0xff]  ;;  %v1020_v53 = vld [vmem:[%s1347_s1 + $0x118] sm:$0xff]  ;;  %v33_v55 = vld [vmem:[%s1349_s0 + $0x30] sm:$0xff] }
  0x12   :  { %452 = vmatpush.bf16.msra.mxu0 %v988_v16  ;;  %v1028_v54 = vld [vmem:[%s1347_s1 + $0x158] sm:$0xff]  ;;  %v40_v56 = vld [vmem:[%s1349_s0 + $0x68] sm:$0xff]  ;;  %v1019_v57 = vld [vmem:[%s1347_s1 + $0x110] sm:$0xff] }
  0x13   :  { %466 = vmatpush.bf16.msra.mxu1 %v996_v17  ;;  %v1027_v58 = vld [vmem:[%s1347_s1 + $0x150] sm:$0xff]  ;;  %v47_v59 = vpack.c.bf16 %v40_v56, %v33_v55  ;;  %v1018_v60 = vld [vmem:[%s1347_s1 + $0x108] sm:$0xff]  ;;  %v1017_v62 = vld [vmem:[%s1347_s1 + $0x100] sm:$0xff] }
  0x14   :  { %480 = vmatpush.bf16.msra.mxu2 %v1004_v18  ;;  %v1026_v61 = vld [vmem:[%s1347_s1 + $0x148] sm:$0xff]  ;;  %v1025_v63 = vld [vmem:[%s1347_s1 + $0x140] sm:$0xff]  ;;  %v38_v1 = vld [vmem:[%s1349_s0 + $0x58] sm:$0xff] }
  0x15   :  { %494 = vmatpush.bf16.msra.mxu3 %v1012_v19  ;;  %v31_v0 = vld [vmem:[%s1349_s0 + $0x20] sm:$0xff]  ;;  %v32_v2 = vld [vmem:[%s1349_s0 + $0x28] sm:$0xff]  ;;  %v1041_v6 = vld [vmem:[%s1351_s3 + $0x38] sm:$0xff] }
  0x16   :  { %453 = vmatpush.bf16.msra.mxu0 %v987_v20  ;;  %v39_v3 = vld [vmem:[%s1349_s0 + $0x60] sm:$0xff]  ;;  %v45_v4 = vpack.c.bf16 %v38_v1, %v31_v0  ;;  %v1040_v7 = vld [vmem:[%s1351_s3 + $0x30] sm:$0xff]  ;;  %v1039_v8 = vld [vmem:[%s1351_s3 + $0x28] sm:$0xff] }
  0x17   :  { %467 = vmatpush.bf16.msra.mxu1 %v995_v21  ;;  %v46_v5 = vpack.c.bf16 %v39_v3, %v32_v2  ;;  %v1038_v9 = vld [vmem:[%s1351_s3 + $0x20] sm:$0xff]  ;;  %v1037_v10 = vld [vmem:[%s1351_s3 + $0x18] sm:$0xff]  ;;  %v1036_v11 = vld [vmem:[%s1351_s3 + $0x10] sm:$0xff] }
  0x18   :  { %481 = vmatpush.bf16.msra.mxu2 %v1003_v22  ;;  %v1035_v12 = vld [vmem:[%s1351_s3 + $0x8] sm:$0xff]  ;;  %v1034_v16 = vld [vmem:[%s1351_s3] sm:$0xff]  ;;  %v1049_v18 = vld [vmem:[%s1352_s5 + $0x38] sm:$0xff] }
  0x19   :  { %495 = vmatpush.bf16.msra.mxu3 %v1011_v23  ;;  %v1055_v17 = vld [vmem:[%s1348_s2] ss:$0 sm:$0xff]  ;;  %v1048_v20 = vld [vmem:[%s1352_s5 + $0x30] sm:$0xff] }
  0x1a   :  { %454 = vmatpush.bf16.msra.mxu0 %v986_v24  ;;  %v1056_v55 = vld [vmem:[%s1350_s4] ss:$0 sm:$0xff] }
  0x1b   :  { %468 = vmatpush.bf16.msra.mxu1 %v994_v25  ;;  %v1047_v25 = vld [vmem:[%s1352_s5 + $0x28] sm:$0xff] }
  0x1c   :  { %482 = vmatpush.bf16.msra.mxu2 %v1002_v26 }
  0x1d   :  { %496 = vmatpush.bf16.msra.mxu3 %v1010_v27 }
  0x1e   :  { %455 = vmatpush.bf16.msra.mxu0 %v985_v28 }
  0x1f   :  { %469 = vmatpush.bf16.msra.mxu1 %v993_v29  ;;  %v1046_v29 = vld [vmem:[%s1352_s5 + $0x20] sm:$0xff] }
  0x20   :  { %483 = vmatpush.bf16.msra.mxu2 %v1001_v36 }
  0x21   :  { %497 = vmatpush.bf16.msra.mxu3 %v1009_v37  ;;  %456 = vmatmul.bf16.vlgmr.msra.gmra.mxu0 %v41_v40 }
  0x22   :  { %504 = vmatpush.bf16.msrb.mxu0 %v1024_v34  ;;  %470 = vmatmul.bf16.vlgmr.msra.gmra.mxu1 %v42_v43 }
  0x23   :  { %518 = vmatpush.bf16.msrb.mxu1 %v1032_v35  ;;  %484 = vmatmul.bf16.vlgmr.msra.gmra.mxu2 %v43_v47 }
  0x24   :  { %539 = vmatpush.bf16.msrb.mxu2 %v1033_v44  ;;  %498 = vmatmul.bf16.vlgmr.msra.gmra.mxu3 %v44_v48 }
  0x25   :  { %617 = vmatpush.bf16.msrb.mxu3 %v1041_v6 }
  0x26   :  { %505 = vmatpush.bf16.msrb.mxu0 %v1023_v45 }
  0x27   :  { %519 = vmatpush.bf16.msrb.mxu1 %v1031_v46 }
  0x28   :  { %702 = vmatpush.bf16.msra.mxu2 %v1049_v18 }
  0x29   :  { %618 = vmatpush.bf16.msrb.mxu3 %v1040_v7 }
  0x2a   :  { %506 = vmatpush.bf16.msrb.mxu0 %v1022_v49 }
  0x2b   :  { %520 = vmatpush.bf16.msrb.mxu1 %v1030_v50  ;;  %v1045_v50 = vld [vmem:[%s1352_s5 + $0x18] sm:$0xff] }
  0x2c   :  { %703 = vmatpush.bf16.msra.mxu2 %v1048_v20 }
  0x2d   :  { %619 = vmatpush.bf16.msrb.mxu3 %v1039_v8 }
  0x2e   :  { %507 = vmatpush.bf16.msrb.mxu0 %v1021_v51  ;;  %v1044_v51 = vld [vmem:[%s1352_s5 + $0x10] sm:$0xff] }
  0x2f   :  { %521 = vmatpush.bf16.msrb.mxu1 %v1029_v52  ;;  %v1043_v52 = vld [vmem:[%s1352_s5 + $0x8] sm:$0xff] }
  0x30   :  { %704 = vmatpush.bf16.msra.mxu2 %v1047_v25 }
  0x31   :  { %620 = vmatpush.bf16.msrb.mxu3 %v1038_v9 }
  0x32   :  { %508 = vmatpush.bf16.msrb.mxu0 %v1020_v53  ;;  %v1042_v53 = vld [vmem:[%s1352_s5] sm:$0xff] }
  0x33   :  { %522 = vmatpush.bf16.msrb.mxu1 %v1028_v54  ;;  %920 = vmatmul.msk.bf16.vlgmr.msrb.gmra.mxu2 %vm444_vm0, %v47_v59 }
  0x34   :  { %705 = vmatpush.bf16.msra.mxu2 %v1046_v29 }
  0x35   :  { %621 = vmatpush.bf16.msrb.mxu3 %v1037_v10 }
  0x36   :  { %509 = vmatpush.bf16.msrb.mxu0 %v1019_v57 }
  0x37   :  { %523 = vmatpush.bf16.msrb.mxu1 %v1027_v58 }
  0x38   :  { %706 = vmatpush.bf16.msra.mxu2 %v1045_v50 }
  0x39   :  { %622 = vmatpush.bf16.msrb.mxu3 %v1036_v11 }
  0x3a   :  { %510 = vmatpush.bf16.msrb.mxu0 %v1018_v60 }
  0x3b   :  { %524 = vmatpush.bf16.msrb.mxu1 %v1026_v61 }
  0x3c   :  { %707 = vmatpush.bf16.msra.mxu2 %v1044_v51 }
  0x3d   :  { %623 = vmatpush.bf16.msrb.mxu3 %v1035_v12 }
  0x3e   :  { %511 = vmatpush.bf16.msrb.mxu0 %v1017_v62 }
  0x3f   :  { %525 = vmatpush.bf16.msrb.mxu1 %v1025_v63  ;;  %v1057_v63 = vld [vmem:[%s1353_s6] ss:$0 sm:$0xff] }
  0x40   :  { %708 = vmatpush.bf16.msra.mxu2 %v1043_v52 }
  0x41   :  { %512 = vmatmul.bf16.vlgmr.msrb.gmra.mxu0 %v45_v4  ;;  %624 = vmatpush.bf16.msrb.mxu3 %v1034_v16 }
  0x42   :  { %526 = vmatmul.bf16.vlgmr.msrb.gmra.mxu1 %v46_v5 }
  0x44   :  { %709 = vmatpush.bf16.msra.mxu2 %v1042_v53 }
  0x9e   :  { %v457_v13 = vpop.f32.mrf.mxu0 }
  0x9f   :  { %v471_v14 = vpop.f32.mrf.mxu1  ;;  %v458_v19 = vadd.f32 %v1055_v17, %v457_v13 }
  0xa1   :  { %v472_v24 = vadd.f32 %v471_v14, %v458_v19 }
  0xa6   :  { %v485_v15 = vpop.f32.mrf.mxu2  ;;  %v459_v21 = vpop.f32.mrf.mxu0 }
  0xa7   :  { %v473_v22 = vpop.f32.mrf.mxu1  ;;  %v499_v26 = vpop.f32.mrf.mxu3  ;;  %v460_v27 = vadd.f32 %v1055_v17, %v459_v21  ;;  %v486_v28 = vadd.f32 %v485_v15, %v472_v24 }
  0xa9   :  { %v474_v30 = vadd.f32 %v473_v22, %v460_v27  ;;  %v500_v33 = vadd.f32 %v499_v26, %v486_v28 }
  0xae   :  { %v487_v23 = vpop.f32.mrf.mxu2 }
  0xaf   :  { %v488_v35 = vadd.f32 %v487_v23, %v474_v30  ;;  %v501_v37 = vpop.f32.mrf.mxu3 }
  0xb1   :  { %v502_v38 = vadd.f32 %v501_v37, %v488_v35 }
  0xb6   :  { %v541_v34 = vpop.f32.mrf.mxu2 }
  0xbe   :  { %v513_v31 = vpop.f32.mrf.mxu0  ;;  %v543_v45 = vpop.f32.mrf.mxu2 }
  0xbf   :  { %v527_v32 = vpop.f32.mrf.mxu1  ;;  %v514_v36 = vadd.f32 %v513_v31, %v500_v33 }
  0xc1   :  { %v528_v39 = vadd.f32 %v527_v32, %v514_v36 }
  0xc3   :  { %v542_v43 = vadd.f32 %v541_v34, %v528_v39 }
  0xc5   :  { %v546_v47 = vmax.f32 %v542_v43, 0.0 }
  0xc6   :  { %v515_v40 = vpop.f32.mrf.mxu0 }
  0xc7   :  { %v516_v41 = vadd.f32 %v515_v40, %v502_v38  ;;  %v529_v42 = vpop.f32.mrf.mxu1 }
  0xc9   :  { %v530_v44 = vadd.f32 %v529_v42, %v516_v41 }
  0xcb   :  { %v544_v46 = vadd.f32 %v543_v45, %v530_v44 }
  0xcd   :  { %v547_v48 = vmax.f32 %v544_v46, 0.0 }
  0xcf   :  { %v548_v49 = vpack.c.bf16 %v547_v48, %v546_v47 }
  0xd1   :  { %625 = vmatmul.bf16.vlgmr.msrb.gmra.mxu3 %v548_v49 }
 0x154   :  { %v626_v54 = vpop.f32.mrf.mxu3 }
 0x155   :  { %v627_v56 = vadd.f32 %v1056_v55, %v626_v54 }
 0x157   :  { %v631_v59 = vmax.f32 %v627_v56, 0.0 }
 0x15c   :  { %v628_v57 = vpop.f32.mrf.mxu3 }
 0x15d   :  { %v629_v58 = vadd.f32 %v1056_v55, %v628_v57 }
 0x15f   :  { %v632_v60 = vmax.f32 %v629_v58, 0.0 }
 0x161   :  { %v633_v61 = vpack.c.bf16 %v632_v60, %v631_v59 }
 0x163   :  { %710 = vmatmul.bf16.vlgmr.msra.gmra.mxu2 %v633_v61 }
 0x1e6   :  { %v711_v62 = vpop.f32.mrf.mxu2 }
 0x1e7   :  { %v712_v1 = vadd.f32 %v1057_v63, %v711_v62 }
 0x1ee   :  { %v713_v0 = vpop.f32.mrf.mxu2 }
 0x1ef   :  { %v714_v2 = vadd.f32 %v1057_v63, %v713_v0 }
 0x1f1   :  { %v1053_v3 = vpack.c.bf16 %v714_v2, %v712_v1 }
 0x1f3   :  { %1054 = vst [vmem:[%s1354_s7] sm:$0xff] %v1053_v3  }

</bundles_post_ra>
